<compile_context>
chip_gen: v6e
topology: v6e:2x2x1
jax: 0.10.0
libtpu: 0.0.40
codegen_flags: <defaults>
</compile_context>

<pallas_src>
import functools

import jax
import jax.numpy as jnp
from jax.experimental import pallas as pl
from jax.experimental.pallas import tpu as pltpu

_LANE = 128
_SUBLANE = 8


def _round_up(x, m):
    return ((x + m - 1) // m) * m


def _elem_term(d, lbl, margin):
    """Per-element contrastive term in f32 (shared by kernel and epilogue)."""
    d = d.astype(jnp.float32)
    lbl = lbl.astype(jnp.float32)
    hinge = jnp.maximum(margin - d, 0.0)          # relu(margin - d)
    return lbl * (d * d) + (1.0 - lbl) * (hinge * hinge)


def _contrastive_kernel(d_ref, l_ref, out_ref, *, margin, tm, rows, steps,
                        need_mask):
    i = pl.program_id(1)

    @pl.when(i == 0)
    def _():
        out_ref[...] = jnp.zeros_like(out_ref)

    term = _elem_term(d_ref[...], l_ref[...], margin)

    if need_mask:
        # Logical (unclamped) first row of this block.  Rows at/past `rows`
        # are either Pallas edge padding (unspecified contents) or clamped
        # duplicate blocks -> zero their contribution.  Pure VPU work,
        # negligible next to the HBM DMA.
        row0 = (pl.program_id(0) * steps + i) * tm
        rid = row0 + jax.lax.broadcasted_iota(jnp.int32, term.shape, 0)
        term = jnp.where(rid < rows, term, 0.0)

    # Fold (tm, 128) -> (8, 128) with a layout-preserving reshape + VPU adds
    # (partial tree reduction, no cross-lane XLU work, no carried scalar),
    # accumulating straight into the resident output block.
    out_ref[...] += term.reshape(-1, _SUBLANE, term.shape[-1]).sum(axis=0)


def _device_defaults():
    """(num_splits, tile_m) defaults per TPU generation (safe fallbacks)."""
    kind = ""
    try:
        kind = jax.devices()[0].device_kind.lower()
    except Exception:
        pass
    two_tc = ("v4" in kind) or ("v5p" in kind) or ("7" in kind)
    tile_m = 8192 if "7" in kind else 4096
    return (2 if two_tc else 1), tile_m


def contrastive_loss(euclidean_distance, label, margin=1.0, *,
                     tile_m=None, num_splits=None, vmem_limit_bytes=None):
    """Pallas TPU implementation of ContrastiveLoss.forward.

    euclidean_distance, label: same-shaped arrays (any shape; float / int /
    bool dtypes — keep labels in their narrow dtype, the kernel up-casts).
    Returns a scalar float32 loss identical to the PyTorch module.
    """
    assert euclidean_distance.shape == label.shape
    n = int(euclidean_distance.size)
    assert n > 0

    margin = float(margin)
    d_flat = jnp.ravel(euclidean_distance)
    l_flat = jnp.ravel(label)

    auto_splits, auto_tile = _device_defaults()
    num_splits = auto_splits if num_splits is None else max(1, int(num_splits))
    tile_m = auto_tile if tile_m is None else int(tile_m)
    tile_m = max(_SUBLANE, _round_up(tile_m, _SUBLANE))

    rows = n // _LANE                      # full lane-dense rows
    rem = n - rows * _LANE                 # ragged tail (< 128 elements)
    inv_denom = 1.0 / (2.0 * float(n))

    # Tiny inputs: a kernel launch is not worth it.
    if rows < _SUBLANE:
        return jnp.sum(_elem_term(d_flat, l_flat, margin)) * inv_denom

    main = rows * _LANE
    if rem == 0:
        d2 = d_flat.reshape(rows, _LANE)   # free, layout-preserving reshape
        l2 = l_flat.reshape(rows, _LANE)
    else:
        # Ragged size: one prefix copy of the main body (aligned sizes stay
        # fully zero-copy); the <128-element tail goes to the JAX epilogue.
        d2 = jax.lax.slice(d_flat, (0,), (main,)).reshape(rows, _LANE)
        l2 = jax.lax.slice(l_flat, (0,), (main,)).reshape(rows, _LANE)

    # Tile sizing: tm is a multiple of 8 and never exceeds the row count, so
    # every block start is in-range (partial blocks only at the trailing edge).
    tm = min(tile_m, (rows // _SUBLANE) * _SUBLANE)
    nblocks = -(-rows // tm)
    num_splits = min(num_splits, nblocks)
    steps = -(-nblocks // num_splits)
    need_mask = (num_splits * steps * tm != rows)
    last_block = nblocks - 1

    def in_map(c, i):
        # Clamp so over-shooting grid steps re-read a valid block (their
        # contribution is masked to zero inside the kernel).
        return (jnp.minimum(c * steps + i, last_block), 0)

    def out_map(c, i):
        return (c, 0)

    # Double-buffered inputs must fit the scoped VMEM limit on every gen.
    blk_bytes = tm * _LANE * (jnp.dtype(d2.dtype).itemsize +
                              jnp.dtype(l2.dtype).itemsize)
    needed = 2 * blk_bytes + (2 << 20)
    if vmem_limit_bytes is None:
        vmem_limit_bytes = max(needed, 32 * 1024 * 1024)
    vmem_limit = int(max(vmem_limit_bytes, needed))

    kernel = functools.partial(_contrastive_kernel, margin=margin, tm=tm,
                               rows=rows, steps=steps, need_mask=need_mask)

    partials = pl.pallas_call(
        kernel,
        out_shape=jax.ShapeDtypeStruct((num_splits * _SUBLANE, _LANE),
                                       jnp.float32),
        grid_spec=pltpu.PrefetchScalarGridSpec(
            num_scalar_prefetch=0,
            grid=(num_splits, steps),
            in_specs=[
                pl.BlockSpec((tm, _LANE), in_map),
                pl.BlockSpec((tm, _LANE), in_map),
            ],
            out_specs=pl.BlockSpec((_SUBLANE, _LANE), out_map),
        ),
        compiler_params=pltpu.CompilerParams(
            dimension_semantics=("parallel", "arbitrary"),
            vmem_limit_bytes=vmem_limit,
        ),
    )(d2, l2)

    total = jnp.sum(partials)
    if rem:
        d_t = jax.lax.slice(d_flat, (main,), (n,))
        l_t = jax.lax.slice(l_flat, (main,), (n,))
        total = total + jnp.sum(_elem_term(d_t, l_t, margin))
    return total * inv_denom


def contrastive_loss_ref(d, label, margin=1.0):
    """Plain-JAX reference matching the PyTorch forward exactly."""
    d = d.astype(jnp.float32)
    label = label.astype(jnp.float32)
    term = label * d ** 2 + (1.0 - label) * jnp.maximum(margin - d, 0.0) ** 2
    return jnp.mean(term) / 2.0


if __name__ == "__main__":
    key = jax.random.PRNGKey(0)
    k1, k2, k3, k4, k5, k6 = jax.random.split(key, 6)
    margin = 1.0

    # Case 1: lane-aligned (n % 128 == 0) zero-copy path with a forced small
    # tile and 2 splits -> exercises in-kernel tail-row masking + index clamp.
    d1 = jax.random.uniform(k1, (48, 128), jnp.float32, 0.0, 2.0)
    l1 = (jax.random.uniform(k2, (48, 128)) > 0.5).astype(jnp.float32)
    out1 = jax.block_until_ready(
        contrastive_loss(d1, l1, margin=margin, tile_m=32, num_splits=2))
    ref1 = contrastive_loss_ref(d1, l1, margin=margin)
    assert jnp.allclose(out1, ref1, rtol=1e-5, atol=1e-6), (out1, ref1)

    # Case 2: ragged size (n % 128 != 0) with narrow on-the-wire dtypes
    # (bf16 distances, int8 labels) -> kernel on the main body, tiny JAX
    # epilogue for the <128-element tail.
    d2 = jax.random.uniform(k3, (33, 100), jnp.float32, 0.0, 2.0)
    l2 = jax.random.uniform(k4, (33, 100)) > 0.5
    out2 = jax.block_until_ready(
        contrastive_loss(d2.astype(jnp.bfloat16), l2.astype(jnp.int8),
                         margin=margin))
    ref2 = contrastive_loss_ref(d2.astype(jnp.bfloat16).astype(jnp.float32),
                                l2.astype(jnp.float32), margin=margin)
    assert jnp.allclose(out2, ref2, rtol=2e-3, atol=2e-3), (out2, ref2)

    # Case 3: aligned input that exactly tiles (no mask code emitted at all),
    # generation-default tile / split settings.
    d3 = jax.random.uniform(k5, (512, 256), jnp.float32, 0.0, 2.0)
    l3 = (jax.random.uniform(k6, (512, 256)) > 0.5).astype(jnp.float32)
    out3 = jax.block_until_ready(contrastive_loss(d3, l3, margin=margin))
    ref3 = contrastive_loss_ref(d3, l3, margin=margin)
    assert jnp.allclose(out3, ref3, rtol=1e-5, atol=1e-6), (out3, ref3)

    # Case 4: tiny input (< 1 lane-row) -> pure-JAX fallback path.
    d4 = d2[:1, :106].reshape(-1)
    l4 = l2[:1, :106].reshape(-1).astype(jnp.float32)
    out4 = jax.block_until_ready(contrastive_loss(d4, l4, margin=margin))
    ref4 = contrastive_loss_ref(d4, l4, margin=margin)
    assert jnp.allclose(out4, ref4, rtol=1e-5, atol=1e-6), (out4, ref4)

    print("KERNEL_OK")
</pallas_src>

<mosaic_0001>
module attributes {stable_mosaic.version = 11 : i64} {
  func.func @_contrastive_kernel(%arg0: i32, %arg1: i32, %arg2: memref<32x128xf32, #tpu.memory_space<vmem>>, %arg3: memref<32x128xf32, #tpu.memory_space<vmem>>, %arg4: memref<8x128xf32, #tpu.memory_space<vmem>>) attributes {dimension_semantics = [#tpu.dimension_semantics<parallel>, #tpu.dimension_semantics<arbitrary>], iteration_bounds = array<i64: 2, 1>, scalar_prefetch = 0 : i64, scratch_operands = 0 : i64, tpu.core_type = #tpu.core_type<tc>, window_params = [{transform_indices = @transform_0, window_bounds = array<i64: 32, 128>}, {transform_indices = @transform_1, window_bounds = array<i64: 32, 128>}, {transform_indices = @transform_2, window_bounds = array<i64: 8, 128>}]} {
    %c0_i32 = arith.constant 0 : i32
    %0 = arith.cmpi eq, %arg1, %c0_i32 : i32
    %1 = arith.extui %0 : i1 to i32
    %c0_i32_0 = arith.constant 0 : i32
    %2 = arith.cmpi ne, %1, %c0_i32_0 : i32
    scf.if %2 {
      %cst_12 = arith.constant 0.000000e+00 : f32
      %31 = vector.broadcast %cst_12 : f32 to vector<8x128xf32>
      %c0_13 = arith.constant 0 : index
      %c0_14 = arith.constant 0 : index
      %32 = vector.load %arg4[%c0_13, %c0_14] : memref<8x128xf32, #tpu.memory_space<vmem>>, vector<8x128xf32>
      tpu.vector_store %arg4[%c0_13, %c0_14], %31 {strides = array<i32>} : memref<8x128xf32, #tpu.memory_space<vmem>>, vector<8x128xf32>,
    } else {
    }
    %c0 = arith.constant 0 : index
    %c0_1 = arith.constant 0 : index
    %3 = vector.load %arg2[%c0, %c0_1] : memref<32x128xf32, #tpu.memory_space<vmem>>, vector<32x128xf32>
    %c0_2 = arith.constant 0 : index
    %c0_3 = arith.constant 0 : index
    %4 = vector.load %arg3[%c0_2, %c0_3] : memref<32x128xf32, #tpu.memory_space<vmem>>, vector<32x128xf32>
    %cst = arith.constant 1.000000e+00 : f32
    %5 = vector.broadcast %cst : f32 to vector<32x128xf32>
    %6 = arith.subf %5, %3 : vector<32x128xf32>
    %cst_4 = arith.constant 0.000000e+00 : f32
    %7 = vector.broadcast %cst_4 : f32 to vector<32x128xf32>
    %8 = arith.maximumf %6, %7 : vector<32x128xf32>
    %9 = arith.mulf %3, %3 : vector<32x128xf32>
    %10 = arith.mulf %4, %9 : vector<32x128xf32>
    %cst_5 = arith.constant 1.000000e+00 : f32
    %11 = vector.broadcast %cst_5 : f32 to vector<32x128xf32>
    %12 = arith.subf %11, %4 : vector<32x128xf32>
    %13 = arith.mulf %8, %8 : vector<32x128xf32>
    %14 = arith.mulf %12, %13 : vector<32x128xf32>
    %15 = arith.addf %10, %14 : vector<32x128xf32>
    %c1_i32 = arith.constant 1 : i32
    %16 = arith.muli %arg0, %c1_i32 : i32
    %17 = arith.addi %16, %arg1 : i32
    %c32_i32 = arith.constant 32 : i32
    %18 = arith.muli %17, %c32_i32 : i32
    %19 = tpu.iota {dimensions = array<i32: 0>} : vector<32x128xi32>
    %20 = vector.broadcast %18 : i32 to vector<32x128xi32>
    %21 = arith.addi %20, %19 : vector<32x128xi32>
    %c48_i32 = arith.constant 48 : i32
    %22 = vector.broadcast %c48_i32 : i32 to vector<32x128xi32>
    %23 = arith.cmpi slt, %21, %22 : vector<32x128xi32>
    %cst_6 = arith.constant 0.000000e+00 : f32
    %24 = vector.broadcast %cst_6 : f32 to vector<32x128xf32>
    %25 = arith.select %23, %15, %24 : vector<32x128xi1>, vector<32x128xf32>
    %c0_7 = arith.constant 0 : index
    %c0_8 = arith.constant 0 : index
    %26 = vector.load %arg4[%c0_7, %c0_8] : memref<8x128xf32, #tpu.memory_space<vmem>>, vector<8x128xf32>
    %27 = vector.shape_cast %25 : vector<32x128xf32> to vector<4x8x128xf32>
    %cst_9 = arith.constant dense<0.000000e+00> : vector<8x128xf32>
    %28 = vector.multi_reduction <add>, %27, %cst_9 [0] : vector<4x8x128xf32> to vector<8x128xf32>
    %29 = arith.addf %26, %28 : vector<8x128xf32>
    %c0_10 = arith.constant 0 : index
    %c0_11 = arith.constant 0 : index
    %30 = vector.load %arg4[%c0_10, %c0_11] : memref<8x128xf32, #tpu.memory_space<vmem>>, vector<8x128xf32>
    tpu.vector_store %arg4[%c0_10, %c0_11], %29 {strides = array<i32>} : memref<8x128xf32, #tpu.memory_space<vmem>>, vector<8x128xf32>,
    return
  }
  func.func @transform_0(%arg0: i32, %arg1: i32) -> (i32, i32) {
    %c1_i32 = arith.constant 1 : i32
    %0 = arith.muli %arg0, %c1_i32 : i32
    %1 = arith.addi %0, %arg1 : i32
    %c1_i32_0 = arith.constant 1 : i32
    %2 = arith.minsi %1, %c1_i32_0 : i32
    %c0_i32 = arith.constant 0 : i32
    %c0_i32_1 = arith.constant 0 : i32
    return %2, %c0_i32 : i32, i32
  }
  func.func @transform_1(%arg0: i32, %arg1: i32) -> (i32, i32) {
    %c1_i32 = arith.constant 1 : i32
    %0 = arith.muli %arg0, %c1_i32 : i32
    %1 = arith.addi %0, %arg1 : i32
    %c1_i32_0 = arith.constant 1 : i32
    %2 = arith.minsi %1, %c1_i32_0 : i32
    %c0_i32 = arith.constant 0 : i32
    %c0_i32_1 = arith.constant 0 : i32
    return %2, %c0_i32 : i32, i32
  }
  func.func @transform_2(%arg0: i32, %arg1: i32) -> (i32, i32) {
    %c0_i32 = arith.constant 0 : i32
    %c0_i32_0 = arith.constant 0 : i32
    return %arg0, %c0_i32 : i32, i32
  }
}

</mosaic_0001>

<bundles_post_ra>
// kernel: tpu_custom_call.1
= control target key start
LH: loop header
LB: loop body
LE: loop exit
PB: predicated region body
PF: predicated region fallthrough
CT: control target
= control target key end

     0   :  { %s976_s0 = inlined_call_operand.hbm [shape: f32[48,128], index: 0, kind: input, shape index: {}]   ;;  %s977_s1 = inlined_call_operand.hbm [shape: f32[48,128], index: 1, kind: input, shape index: {}]   ;;  %s978_s2 = inlined_call_operand.hbm [shape: f32[16,128], index: 2, kind: output, shape index: {}]  }
   0x1   :  { %980 = sst [smem:[#allocation11_spill]] %s976_s0 }
   0x2   :  { %7 = vsyncpa [#allocation3], 0 }
   0x3   :  { %9 = vsyncpa [#allocation3 + $0x1], 0 }
   0x4   :  { %10 = vsyncpa [#allocation6], 0 }
   0x5   :  { %12 = vsyncpa [#allocation6 + $0x1], 0 }
   0x6   :  { %13 = vsyncpa [#allocation4], 0 }
   0x7   :  { %15 = vsyncpa [#allocation4 + $0x1], 0  ;;  %s745_s9 = smov 0   ;;  %s747_s10 = smov 0  }
   0x8   :  { %s749_s11 = smov 0   ;;  %s751_s12 = smov 0  }
   0x9   :  { %s753_s13 = smov 0   ;;  %s755_s14 = smov 0  }
   0xa   :  { %s757_s15 = smov 0   ;;  %s759_s16 = smov 0  }
   0xb   :  { %s761_s17 = smov 0  }
   0xc LB: > { %s446_s18 = sadd.s32 4294967295, %s721_s17   ;;  %s447_s19 = sadd.s32 4294967294, %s721_s17   ;;  %s721_s17 = sphi %s761_s17, %s21_s17   ;;  %s717_s16 = sphi %s759_s16, %s995_s16   ;;  %s713_s15 = sphi %s757_s15, %s994_s15   ;;  %s709_s14 = sphi %s755_s14, %s993_s14   ;;  %s705_s13 = sphi %s753_s13, %s992_s13   ;;  %s701_s12 = sphi %s751_s12, %s991_s12   ;;  %s697_s11 = sphi %s749_s11, %s990_s11   ;;  %s693_s10 = sphi %s747_s10, %s989_s10   ;;  %s689_s9 = sphi %s745_s9, %s988_s9  }
   0xd   : > { %s33_s20 = sadd.s32 1, %s717_s16  ;;  %p38_p0 = scmp.lt.s32.totalorder %s717_s16, 1 }
   0xe   : > { %p35_p1 = scmp.ge.s32.totalorder %s33_s20, 2  ;;  %s46_s21 = sadd.s32 1, %s709_s14 }
   0xf   : > { %s794_s22 = scalar_select %p38_p0, %s717_s16, 1 }
  0x10   : > { %s997_s20 = smov (%p35_p1, %s33_s20), 0  ;;  %p53_p2 = scmp.ne.s32.totalorder %s709_s14, %s705_s13 }
  0x11   : > { %p54_p3 = scmp.eq.s32.totalorder %s721_s17, 0  ;;  %p41_p4 = scmp.lt.s32.totalorder %s997_s20, 1 }
  0x12   : > { %p59_p5 = scmp.ne.s32.totalorder %s705_s13, %s701_s12  ;;  %p60_p7 = scmp.eq.s32.totalorder %s446_s18, 0 }
  0x13   : > { %p803_p6 = por %p54_p3, %p53_p2  ;;  %s101_s26 = ssub.s32 %s717_s16, %s997_s20 }
  0x14   : > { %s42_s24 = scalar_select %p41_p4, %s997_s20, 1 }
  0x15   : > { %p808_p8 = por %p60_p7, %p59_p5  ;;  %p102_p9 = scmp.eq.s32.totalorder %s101_s26, 0 }
  0x16   : > { %s43_s27 = ssub.s32 %s794_s22, %s42_s24  ;;  %s104_s28 = sadd.s32 1, %s697_s11 }
  0x17   : > { %p44_p10 = scmp.eq.s32.totalorder %s43_s27, 0  ;;  %p114_p11 = scmp.ne.s32.totalorder %s697_s11, %s693_s10 }
  0x18   : > { %s817_s29 = scalar_select %p102_p9, %s697_s11, %s104_s28  }
  0x19   : > { %s820_s30 = scalar_select %p44_p10, %s709_s14, %s46_s21  }
  0x1a   : > { %p115_p12 = scmp.eq.s32.totalorder %s446_s18, 1  ;;  %p120_p13 = scmp.ne.s32.totalorder %s693_s10, %s689_s9 }
  0x1b   : > { %p121_p0 = scmp.eq.s32.totalorder %s447_s19, 1  ;;  %p979_p3 = scmp.ge.s32.totalorder %s721_s17, 2 }
  0x1c   : > { %p826_p1 = por %p115_p12, %p114_p11 }
  0x1d   : > { %p830_p2 = por %p121_p0, %p120_p13  ;;  %137 = sbr.rel (%p979_p3) target bundleno = 104 (0x68), region = 16 }
  0x1f   : > { %s984_s4 = scalar_select %p830_p2, 1, 0 }
  0x22   : > { %140 = sbr.rel (!%p803_p6) target bundleno = 72 (0x48), region = 20  ;;  %s141_s5 = sand.u32 (%p803_p6), 1, %s709_s14  }
  0x23   : > { %s451_s6 = sshll.u32 (%p803_p6), %s794_s22, 2  ;;  %s450_s7 = sshll.u32 (%p803_p6), %s141_s5, 5 }
  0x24   : > { %s150_s8 = ssub.s32 (%p803_p6), 6, %s451_s6  ;;  %s844_s19 = scalar_lea.sflag (%p803_p6), [#allocation3], %s141_s5 }
  0x25   : > { %p151_p4 = scmp.lt.s32.totalorder (%p803_p6), %s150_s8, 4  ;;  %s145_s21 = scalar_lea.vmem (%p803_p6), [#allocation2], %s450_s7 }
  0x27   : > { %s999_s8 = smov (!%p151_p4, %s150_s8), 4 }
  0x28   : > { %s841_s12 = sshll.u32 %s999_s8, 7 }
  0x29   : > { %s155_s18 = ssub.s32 512, %s841_s12 }
  0x2a   : > { %156 = vsyncadd %s844_s19, %s155_s18  ;;  %p453_p5 = scmp.ne.s32.totalorder %s841_s12, 0  ;;  %s473_s24 = sshll.u32 %s794_s22, 9 }
  0x2b   : > { %s985_s0 = sld [smem:[#allocation11_spill]]  ;;  %s161_s6 = sshll.u32 %s145_s21, 4  ;;  %s854_s6 = int_to_ptr.vmem [resolvable:$true] %s161_s6 }
  0x31   : > { %s852_s28 = scalar_lea.hbm %s985_s0, %s473_s24  ;;  %s565_s18 = scalar_lea.hbm %s985_s0, 768 }
  0x32   : > { %s561_s5 = scalar_lea.hbm %s852_s28, %s841_s12 }
  0x33   : > { %p562_p7 = scmp.ne.s32.totalorder %s852_s28, %s561_s5  ;;  %p567_p11 = scmp.lt.s32.totalorder %s565_s18, %s561_s5 }
  0x35   : > { %p563_p9 = pnand %p562_p7, %p453_p5 }
  0x37   : > { %p564_p10 = pneg %p563_p9 }
  0x39   : > { %p569_p12 = pnand %p567_p11, %p564_p10 }
  0x3b   : > { %572 = shalt.err (!%p569_p12)
}
  0x3c   : > { %s573_s21 = scalar_lea.vmem %s854_s6, %s841_s12  ;;  %s723_s24 = smov [#allocation2]  }
  0x3d   : > { %p574_p13 = scmp.ne.s32.totalorder %s854_s6, %s573_s21  ;;  %s577_s26 = sshll.u32 %s723_s24, 4  ;;  %s578_s26 = int_to_ptr.vmem [resolvable:$false] %s577_s26 }
  0x3e   : > { %s579_s27 = scalar_lea.vmem %s578_s26, 1024  ;;  %p580_p7 = scmp.lt.s32.totalorder %s854_s6, %s578_s26 }
  0x3f   : > { %p575_p0 = pnand %p574_p13, %p453_p5  ;;  %p581_p9 = scmp.lt.s32.totalorder %s579_s27, %s573_s21 }
  0x41   : > { %p576_p4 = pneg %p575_p0  ;;  %p582_p3 = por %p581_p9, %p580_p7 }
  0x43   : > { %p583_p2 = pnand %p582_p3, %p576_p4 }
  0x45   : > { %586 = shalt.err (!%p583_p2)
}
  0x46   : > { %s724_s5 = smov 128   ;;  %s725_s7 = smov 8  }
  0x47   : > { %167 = dma.hbm_to_vmem [thread:$0]  (%p453_p5), %s852_s28, %s841_s12, %s854_s6, %s844_s19, %s724_s5, %s724_s5, %s725_s7  }
  0x48 PF: > { %170 = sbr.rel (!%p803_p6) target bundleno = 104 (0x68), region = 24  ;;  %s171_s8 = sand.u32 (%p803_p6), 1, %s709_s14  }
  0x49   : > { %s458_s18 = sshll.u32 (%p803_p6), %s794_s22, 2  ;;  %s457_s21 = sshll.u32 (%p803_p6), %s171_s8, 5 }
  0x4a   : > { %s180_s24 = ssub.s32 (%p803_p6), 6, %s458_s18  ;;  %s883_s0 = scalar_lea.sflag (%p803_p6), [#allocation6], %s171_s8 }
  0x4b   : > { %p181_p2 = scmp.lt.s32.totalorder (%p803_p6), %s180_s24, 4  ;;  %s175_s12 = scalar_lea.vmem (%p803_p6), [#allocation5], %s457_s21 }
  0x4d   : > { %s1001_s24 = smov (!%p181_p2, %s180_s24), 4 }
  0x4e   : > { %s880_s26 = sshll.u32 %s1001_s24, 7 }
  0x4f   : > { %s185_s27 = ssub.s32 512, %s880_s26 }
  0x50   : > { %186 = vsyncadd %s883_s0, %s185_s27  ;;  %p460_p6 = scmp.ne.s32.totalorder %s880_s26, 0  ;;  %s474_s23 = sshll.u32 %s794_s22, 9 }
  0x51   : > { %s891_s6 = scalar_lea.hbm %s977_s1, %s474_s23  ;;  %s191_s5 = sshll.u32 %s175_s12, 4  ;;  %s893_s5 = int_to_ptr.vmem [resolvable:$true] %s191_s5 }
  0x52   : > { %s587_s7 = scalar_lea.hbm %s891_s6, %s880_s26  ;;  %s591_s21 = scalar_lea.hbm %s977_s1, 768 }
  0x53   : > { %p588_p3 = scmp.ne.s32.totalorder %s891_s6, %s587_s7  ;;  %p593_p11 = scmp.lt.s32.totalorder %s591_s21, %s587_s7 }
  0x55   : > { %p589_p5 = pnand %p588_p3, %p460_p6 }
  0x57   : > { %p590_p10 = pneg %p589_p5 }
  0x59   : > { %p595_p12 = pnand %p593_p11, %p590_p10 }
  0x5b   : > { %598 = shalt.err (!%p595_p12)
}
  0x5c   : > { %s599_s22 = scalar_lea.vmem %s893_s5, %s880_s26  ;;  %s726_s24 = smov [#allocation5]  }
  0x5d   : > { %p600_p13 = scmp.ne.s32.totalorder %s893_s5, %s599_s22  ;;  %s603_s27 = sshll.u32 %s726_s24, 4  ;;  %s604_s27 = int_to_ptr.vmem [resolvable:$false] %s603_s27 }
  0x5e   : > { %s605_s12 = scalar_lea.vmem %s604_s27, 1024  ;;  %p606_p7 = scmp.lt.s32.totalorder %s893_s5, %s604_s27 }
  0x5f   : > { %p601_p0 = pnand %p600_p13, %p460_p6  ;;  %p607_p9 = scmp.lt.s32.totalorder %s605_s12, %s599_s22 }
  0x61   : > { %p602_p4 = pneg %p601_p0  ;;  %p608_p2 = por %p607_p9, %p606_p7 }
  0x63   : > { %p609_p3 = pnand %p608_p2, %p602_p4 }
  0x65   : > { %612 = shalt.err (!%p609_p3)
}
  0x66   : > { %s727_s23 = smov 128   ;;  %s728_s19 = smov 8  }
  0x67   : > { %197 = dma.hbm_to_vmem [thread:$0]  (%p460_p6), %s891_s6, %s880_s26, %s893_s5, %s883_s0, %s727_s23, %s727_s23, %s728_s19  }
  0x68 PF: > { %p464_p5 = scmp.ge.s32.totalorder %s721_s17, 1  ;;  %p199_p10 = scmp.lt.s32.totalorder %s721_s17, 3 }
  0x6a   : > { %p200_p11 = pnand %p464_p5, %p199_p10 }
  0x6b   : > { %s205_s28 = sand.u32 (!%p200_p11), 1, %s705_s13  }
  0x6c   : > { %203 = sbr.rel (%p200_p11) target bundleno = 150 (0x96), region = 28  ;;  %s465_s7 = sshll.u32 (!%p200_p11), %s205_s28, 5 }
  0x6d   : > { %s206_s8 = scalar_lea.sflag (!%p200_p11), [#allocation3], %s205_s28  ;;  %s209_s18 = scalar_lea.vmem (!%p200_p11), [#allocation2], %s465_s7 }
  0x71   : > { %676 = dma.done.wait (%p808_p8), %s206_s8, 512  }
  0x72   : > { %678 = vsyncadd (%p808_p8), %s206_s8, 4294966784  ;;  %s215_s0 = scalar_lea.sflag [#allocation6], %s205_s28  ;;  %s218_s26 = scalar_lea.vmem [#allocation5], %s465_s7 }
  0x73   : > { %680 = dma.done.wait (%p808_p8), %s215_s0, 512  }
  0x74   : > { %682 = vsyncadd (%p808_p8), %s215_s0, 4294966784  ;;  %v307_v0 = vlaneseq  ;;  %s468_s6 = sshll.u32 %s713_s15, 5  ;;  %v265_v5 = vld [vmem:[%s209_s18] sm:$0xff]  ;;  %v266_v6 = vld [vmem:[%s209_s18 + $0x8] sm:$0xff]  ;;  %s241_s25 = sand.u32 1, %s693_s10  }
  0x75   : > { %v312_v4 = vstv %s468_s6  ;;  %v267_v7 = vld [vmem:[%s209_s18 + $0x10] sm:$0xff]  ;;  %v268_v12 = vld [vmem:[%s209_s18 + $0x18] sm:$0xff]  ;;  %v269_v13 = vld [vmem:[%s218_s26] sm:$0xff]  ;;  %v273_v14 = vsub.f32 1.0, %v265_v5  ;;  %v274_v15 = vsub.f32 1.0, %v266_v6  ;;  %v281_v17 = vmul.f32 %v265_v5, %v265_v5  ;;  %s467_s5 = sshll.u32 %s241_s25, 3 }
  0x76   : > { %v308_v1 = vshrl.u32 %v307_v0, 7  ;;  %v275_v16 = vsub.f32 1.0, %v267_v7  ;;  %v270_v18 = vld [vmem:[%s218_s26 + $0x8] sm:$0xff]  ;;  %v271_v19 = vld [vmem:[%s218_s26 + $0x10] sm:$0xff]  ;;  %v272_v20 = vld [vmem:[%s218_s26 + $0x18] sm:$0xff]  ;;  %v276_v21 = vsub.f32 1.0, %v268_v12  ;;  %v282_v22 = vmul.f32 %v266_v6, %v266_v6 }
  0x77   : > { %v283_v23 = vmul.f32 %v267_v7, %v267_v7  ;;  %v284_v24 = vmul.f32 %v268_v12, %v268_v12  ;;  %v277_v25 = vmax.f32 %v273_v14, 0.0  ;;  %v278_v26 = vmax.f32 %v274_v15, 0.0  ;;  %s470_s21 = sshll.u32 %s713_s15, 7  ;;  %s243_s22 = scalar_lea.vmem [#allocation7], %s467_s5 }
  0x78   : > { %v309_v2 = vadd.s32 8, %v308_v1  ;;  %v310_v3 = vadd.s32 16, %v308_v1  ;;  %v311_v8 = vadd.s32 24, %v308_v1  ;;  %v313_v9 = vadd.s32 %v312_v4, %v308_v1  ;;  %s345_s24 = sshll.u32 %s243_s22, 4  ;;  %s343_s23 = scalar_lea.hbm %s978_s2, %s470_s21  ;;  %s346_s24 = int_to_ptr.vmem [resolvable:$true] %s345_s24 }
  0x79   : > { %v279_v27 = vmax.f32 %v275_v16, 0.0  ;;  %v285_v28 = vmul.f32 %v281_v17, %v269_v13  ;;  %v280_v29 = vmax.f32 %v276_v21, 0.0  ;;  %v286_v30 = vmul.f32 %v282_v22, %v270_v18  ;;  %s332_s19 = scalar_lea.sflag [#allocation4], %s241_s25  ;;  %s613_s28 = scalar_lea.vmem %s346_s24, 128 }
  0x7a   : > { %v314_v10 = vadd.s32 %v312_v4, %v309_v2  ;;  %v315_v11 = vadd.s32 %v312_v4, %v310_v3  ;;  %v287_v31 = vmul.f32 %v283_v23, %v271_v19  ;;  %v288_v32 = vmul.f32 %v284_v24, %v272_v20  ;;  %p614_p8 = scmp.ne.s32.totalorder %s346_s24, %s613_s28  ;;  %s729_s7 = smov [#allocation7]  }
  0x7b   : > { %v289_v33 = vsub.f32 1.0, %v269_v13  ;;  %v290_v34 = vsub.f32 1.0, %v270_v18  ;;  %v291_v35 = vsub.f32 1.0, %v271_v19  ;;  %v292_v36 = vsub.f32 1.0, %v272_v20  ;;  %s617_s8 = sshll.u32 %s729_s7, 4  ;;  %s618_s8 = int_to_ptr.vmem [resolvable:$false] %s617_s8 }
  0x7c   : > { %v293_v37 = vmul.f32 %v277_v25, %v277_v25  ;;  %v294_v38 = vmul.f32 %v278_v26, %v278_v26  ;;  %v295_v39 = vmul.f32 %v279_v27, %v279_v27  ;;  %v296_v40 = vmul.f32 %v280_v29, %v280_v29  ;;  %p615_p6 = pnand %p614_p8, %p826_p1  ;;  %s619_s18 = scalar_lea.vmem %s618_s8, 256 }
  0x7d   : > { %v316_v41 = vadd.s32 %v312_v4, %v311_v8  ;;  %vm317_vm0 = vcmp.lt.s32.totalorder %v313_v9, 48  ;;  %vm318_vm1 = vcmp.lt.s32.totalorder %v314_v10, 48  ;;  %vm319_vm2 = vcmp.lt.s32.totalorder %v315_v11, 48  ;;  %p620_p13 = scmp.lt.s32.totalorder %s346_s24, %s618_s8  ;;  %p621_p0 = scmp.lt.s32.totalorder %s619_s18, %s613_s28 }
  0x7e   : > { %v297_v42 = vmul.f32 %v293_v37, %v289_v33  ;;  %v298_v43 = vmul.f32 %v294_v38, %v290_v34  ;;  %v299_v44 = vmul.f32 %v295_v39, %v291_v35  ;;  %v300_v45 = vmul.f32 %v296_v40, %v292_v36  ;;  %p616_p12 = pneg %p615_p6 }
  0x7f   : > { %vm320_vm3 = vcmp.lt.s32.totalorder %v316_v41, 48  ;;  %p622_p4 = por %p621_p0, %p620_p13 }
  0x80   : > { %v301_v46 = vadd.f32 %v297_v42, %v285_v28  ;;  %v302_v47 = vadd.f32 %v298_v43, %v286_v30  ;;  %v303_v48 = vadd.f32 %v299_v44, %v287_v31  ;;  %v304_v49 = vadd.f32 %v300_v45, %v288_v32 }
  0x81   : > { %p623_p7 = pnand %p622_p4, %p616_p12 }
  0x82   : > { %v321_v50 = vsel %vm317_vm0, %v301_v46, 0.0  ;;  %v322_v51 = vsel %vm318_vm1, %v302_v47, 0.0  ;;  %v323_v52 = vsel %vm319_vm2, %v303_v48, 0.0  ;;  %v324_v54 = vsel %vm320_vm3, %v304_v49, 0.0 }
  0x83   : > { %v326_v53 = vadd.f32 %v322_v51, %v321_v50 }
  0x85   : > { %v327_v55 = vadd.f32 %v326_v53, %v323_v52 }
  0x87   : > { %v328_v56 = vadd.f32 %v327_v55, %v324_v54 }
  0x89   : > { %330 = vst [vmem:[%s243_s22] sm:$0xff] %v328_v56 }
  0x8a   : > { %626 = shalt.err (!%p623_p7)
}
  0x8b   : > { %s627_s15 = scalar_lea.hbm %s343_s23, 128  ;;  %s631_s6 = scalar_lea.hbm %s978_s2, 256 }
  0x8c   : > { %p628_p9 = scmp.ne.s32.totalorder %s343_s23, %s627_s15  ;;  %p632_p5 = scmp.lt.s32.totalorder %s343_s23, %s978_s2 }
  0x8d   : > { %p633_p10 = scmp.lt.s32.totalorder %s631_s6, %s627_s15 }
  0x8e   : > { %p629_p2 = pnand %p628_p9, %p826_p1 }
  0x8f   : > { %p634_p11 = por %p633_p10, %p632_p5 }
  0x90   : > { %p630_p3 = pneg %p629_p2 }
  0x92   : > { %p635_p8 = pnand %p634_p11, %p630_p3 }
  0x94   : > { %638 = shalt.err (!%p635_p8)
}
  0x95   : > { %477 = dma.vmem_to_hbm [thread:$0]  (%p826_p1), %s346_s24, 128, %s343_s23, %s332_s19  }
  0x96 PF: > { %s357_s21 = sand.u32 1, %s689_s9   ;;  %p986_p6 = scmp.ne.s32.totalorder %s984_s4, 0 }
  0x97   : > { %p987_p12 = scmp.ge.s32.totalorder %s721_s17, 2  ;;  %s358_s22 = scalar_lea.sflag [#allocation4], %s357_s21 }
  0x99   : > { %p480_p13 = pnand %p987_p12, %p986_p6 }
  0x9b   : > { %p481_p0 = pneg %p480_p13 }
  0x9d   : > { %684 = dma.done.wait (%p481_p0), %s358_s22, 128  }
  0x9e   : > { %686 = vsyncadd (%p481_p0), %s358_s22, 4294967168  ;;  %s21_s17 = sadd.s32 1, %s721_s17   ;;  %s988_s9 = smov %s693_s10 }
  0x9f   : > { %p18_p4 = scmp.ge.s32.totalorder %s21_s17, 4   ;;  %s989_s10 = smov %s697_s11 }
  0xa0   : > { %s990_s11 = smov %s817_s29  ;;  %s991_s12 = smov %s705_s13 }
  0xa1   : > { %s992_s13 = smov %s709_s14  ;;  %s993_s14 = smov %s820_s30 }
  0xa2   : > { %s994_s15 = smov %s717_s16  ;;  %s995_s16 = smov %s997_s20 }
  0xa3   :  { %20 = sbr.rel (!%p18_p4) target bundleno = 12 (0xc), region = 90 }
  0xa8   :  { %363 = vsyncpa [#allocation3], 1 }
  0xa9   :  { %365 = vsyncpa [#allocation3 + $0x1], 1 }
  0xaa   :  { %366 = vsyncpa [#allocation6], 1 }
  0xab   :  { %368 = vsyncpa [#allocation6 + $0x1], 1 }
  0xac   :  { %369 = vsyncpa [#allocation4], 1 }
  0xad   :  { %371 = vsyncpa [#allocation4 + $0x1], 1 }

</bundles_post_ra>
